<compile_context>
chip_gen: v7x
topology: tpu7x:2x2x1
jax: 0.10.0
libtpu: 0.0.40
codegen_flags: <defaults>
</compile_context>

<pallas_src>
import jax
import jax.numpy as jnp
from jax.experimental import pallas as pl
from jax.experimental.pallas import tpu as pltpu


def _round_up(x, m):
    return (x + m - 1) // m * m


def _num_strips(h, max_strips=4):
    s = min(max_strips, h)
    while h % s:
        s -= 1
    return s


def _make_block_kernel(pitch, r_o_s, cin):
    """pitch = padded row pitch (mult of 8); r_o_s = output rows per strip; cin = real channels."""
    offs = [kh * pitch + kw for kh in range(3) for kw in range(3)]   # 3x3 taps, k = kh*3 + kw

    def kernel(x9_ref, xres_ref, w1_ref, w2_ref, o_ref, h_ref):
        # ---- conv1: ONE K=9*cin bf16 matmul (im2col'd, border rows pre-zeroed host-side),
        # relu, single store into the bf16 h scratch. ---------------------------------------
        h = jnp.dot(x9_ref[...], w1_ref[...], preferred_element_type=jnp.float32)
        h_ref[...] = jnp.maximum(h, 0.0).astype(h_ref.dtype)

        # ---- conv2: chained sum of 9 shifted bf16 tap matmuls (one accumulator expression,
        # no scratch RMW passes; MRB-friendly on v7x). ---------------------------------------
        acc = jnp.dot(h_ref[pl.ds(offs[0], r_o_s), :], w2_ref[0],
                      preferred_element_type=jnp.float32)
        for k in range(1, 9):
            acc = acc + jnp.dot(h_ref[pl.ds(offs[k], r_o_s), :], w2_ref[k],
                                preferred_element_type=jnp.float32)

        # Lane-dense store of relu(conv2) over all padded channels, then overwrite the real
        # channel lanes with the exact f32 identity-shortcut add (+ relu).
        o_ref[...] = jnp.maximum(acc, 0.0).astype(o_ref.dtype)
        o_ref[:, 0:cin] = jnp.maximum(acc[:, 0:cin] + xres_ref[...], 0.0).astype(o_ref.dtype)

    return kernel


def basic_block_nobatchnorm(x_nchw, w1_oihw, w2_oihw, stride=1):
    """out = relu(conv2(relu(conv1(x))) + x), PyTorch NCHW semantics (bias-free convs)."""
    if (stride != 1 or w1_oihw.shape[0] != w1_oihw.shape[1]
            or w1_oihw.shape[1] != x_nchw.shape[1]):
        # TODO(synk): downsample shortcut branch (1x1 strided conv + BatchNorm2d) not implemented.
        raise NotImplementedError("only the identity-shortcut configuration is supported")

    n, cin, h, w = x_nchw.shape
    planes = w1_oihw.shape[0]
    p_pad = _round_up(planes, 128)          # lane-dense output / intermediate channel count
    pitch = _round_up(w + 4, 8)             # padded, sublane-aligned row pitch
    r_o = h * pitch                         # output-slab flat rows per image
    r_h = r_o + 2 * pitch + 8               # padded intermediate rows (conv2 halo + slack)
    strips = _num_strips(h)                 # output-row strips per image (>=3-4 steps/core)
    r_o_s = (h // strips) * pitch           # output rows per strip
    r_h_s = r_o_s + 2 * pitch + 8           # h rows per strip (2-row halo)
    cdt = jnp.bfloat16

    # ---- host prep (one fused XLA pass): NCHW->NHWC, zero-pad, flatten, tap-im2col --------
    x_nhwc = jnp.transpose(x_nchw, (0, 2, 3, 1)).astype(jnp.float32)
    x_pad = jnp.pad(x_nhwc, ((0, 0), (2, 5), (2, pitch - w - 2), (0, 0)))
    x_flat = x_pad.reshape(n, (h + 7) * pitch, cin)

    offs = [kh * pitch + kw for kh in range(3) for kw in range(3)]
    x9 = jnp.concatenate([x_flat[:, o:o + r_h, :] for o in offs], axis=-1)   # (n, r_h, 9*cin)
    # Zero rows whose conv1 output must be zero (h's padding border + flattening junk cols):
    # the kernel then needs no mask input and no mask multiply.
    q = jnp.arange(r_h)
    a, b = q // pitch, q % pitch
    valid = ((a >= 1) & (a <= h) & (b >= 1) & (b <= w)).astype(jnp.float32)
    x9 = (x9 * valid[None, :, None]).astype(cdt)
    # Overlapping row strips (2-row halo duplicated) -> several pipelined grid steps per core.
    x9_s = jnp.stack([x9[:, s * r_o_s: s * r_o_s + r_h_s, :] for s in range(strips)], axis=1)

    # Exact f32 identity shortcut, already in output-slab row order (junk columns are zero).
    xres = x_flat[:, 2 * pitch + 2: 2 * pitch + 2 + r_o, :]
    xres_s = xres.reshape(n, strips, r_o_s, cin)

    # Weights: (O,I,3,3) -> tap-major matmul layouts, zero-padded output channels, bf16.
    w1m = jnp.transpose(w1_oihw, (2, 3, 1, 0)).reshape(9 * cin, planes)
    w1m = jnp.pad(w1m, ((0, 0), (0, p_pad - planes))).astype(cdt)            # (9*cin, p_pad)
    w2m = jnp.transpose(w2_oihw, (2, 3, 1, 0)).reshape(9, planes, planes)
    w2m = jnp.pad(w2m, ((0, 0), (0, p_pad - planes), (0, p_pad - planes))).astype(cdt)

    kernel = _make_block_kernel(pitch, r_o_s, cin)

    # VMEM budget: padded-lane block sizes, double-buffered, + scratch + compiler headroom;
    # capped by the queried physical VMEM (not a hard 40 MiB clamp).
    lane = lambda c: _round_up(c, 128)
    blk_bytes = (r_h_s * lane(9 * cin) * 2 + r_o_s * lane(cin) * 4 + r_o_s * p_pad * 4
                 + _round_up(9 * cin, 16) * p_pad * 2 + 9 * p_pad * p_pad * 2)
    vmem_est = 2 * blk_bytes + r_h_s * p_pad * 2 + 4 * r_o_s * p_pad * 4 + (4 << 20)
    try:
        phys_vmem = int(pltpu.get_tpu_info().vmem_capacity_bytes)
    except Exception:
        phys_vmem = 64 << 20
    vmem_cap = max(phys_vmem * 3 // 4, 32 << 20)
    vmem_limit = int(min(max(vmem_est, 16 << 20), vmem_cap))

    flops = (n * strips * (2 * r_h_s * 9 * cin * p_pad + 2 * 9 * r_o_s * p_pad * p_pad)
             + 2 * n * r_o * cin)
    bytes_accessed = (n * strips * (r_h_s * 9 * cin * 2 + r_o_s * cin * 4)
                      + n * r_o * p_pad * 4
                      + 9 * cin * p_pad * 2 + 9 * p_pad * p_pad * 2)

    out_flat = pl.pallas_call(
        kernel,
        out_shape=jax.ShapeDtypeStruct((n, r_o, p_pad), jnp.float32),
        grid_spec=pltpu.PrefetchScalarGridSpec(
            num_scalar_prefetch=0,
            grid=(n, strips),
            in_specs=[
                pl.BlockSpec((None, None, r_h_s, 9 * cin), lambda i, s: (i, s, 0, 0)),  # x9
                pl.BlockSpec((None, None, r_o_s, cin), lambda i, s: (i, s, 0, 0)),      # residual
                pl.BlockSpec((9 * cin, p_pad), lambda i, s: (0, 0)),                    # w1
                pl.BlockSpec((9, p_pad, p_pad), lambda i, s: (0, 0, 0)),                # w2
            ],
            out_specs=pl.BlockSpec((None, r_o_s, p_pad), lambda i, s: (i, s, 0)),
            scratch_shapes=[pltpu.VMEM((r_h_s, p_pad), cdt)],                 # bf16 h scratch
        ),
        compiler_params=pltpu.CompilerParams(
            dimension_semantics=("parallel", "parallel"),
            vmem_limit_bytes=vmem_limit,
        ),
        cost_estimate=pl.CostEstimate(flops=flops, transcendentals=0,
                                      bytes_accessed=bytes_accessed),
    )(x9_s, xres_s, w1m, w2m)

    # (N, H*pitch, p_pad) -> NCHW, dropping flattening junk columns and channel lane-padding.
    out = out_flat.reshape(n, h, pitch, p_pad)[:, :, :w, :planes]
    return jnp.transpose(out, (0, 3, 1, 2))


if __name__ == "__main__":
    key = jax.random.PRNGKey(0)
    k1, k2, k3 = jax.random.split(key, 3)
    N, C, H, W = 2, 4, 16, 16
    planes, stride = 4, 1                                              # identity shortcut

    x = jax.random.normal(k1, (N, C, H, W), jnp.float32)
    # Deterministic conv weights (shapes match nn.Conv2d, bias=False).
    w1 = jax.random.uniform(k2, (planes, C, 3, 3), jnp.float32, -1.0, 1.0) * ((C * 9) ** -0.5)
    w2 = jax.random.uniform(k3, (planes, planes, 3, 3), jnp.float32, -1.0, 1.0) * ((planes * 9) ** -0.5)

    out = jax.jit(basic_block_nobatchnorm)(x, w1, w2)
    out = jax.block_until_ready(out)

    # Pure-XLA f32 reference with PyTorch conv semantics (NCHW / OIHW).
    def ref(x, w1, w2):
        dn = ("NCHW", "OIHW", "NCHW")
        hh = jax.lax.conv_general_dilated(x, w1, (1, 1), ((1, 1), (1, 1)), dimension_numbers=dn)
        hh = jnp.maximum(hh, 0.0)
        oo = jax.lax.conv_general_dilated(hh, w2, (1, 1), ((1, 1), (1, 1)), dimension_numbers=dn)
        return jnp.maximum(oo + x, 0.0)

    expected = ref(x, w1, w2)
    assert out.shape == expected.shape and out.dtype == expected.dtype
    err = float(jnp.max(jnp.abs(out - expected)))
    # bf16 matmul operands (f32 accumulation, exact f32 residual) -> loosened tolerance.
    assert jnp.allclose(out, expected, rtol=5e-2, atol=5e-2), f"max abs err {err}"
    print("KERNEL_OK")
</pallas_src>

<mosaic_0001>
module attributes {stable_mosaic.version = 11 : i64} {
  func.func @kernel(%arg0: i32, %arg1: i32, %arg2: memref<1x1x152x36xbf16, #tpu.memory_space<vmem>>, %arg3: memref<1x1x96x4xf32, #tpu.memory_space<vmem>>, %arg4: memref<36x128xbf16, #tpu.memory_space<vmem>>, %arg5: memref<9x128x128xbf16, #tpu.memory_space<vmem>>, %arg6: memref<1x96x128xf32, #tpu.memory_space<vmem>>, %arg7: memref<152x128xbf16, #tpu.memory_space<vmem>>) attributes {dimension_semantics = [#tpu.dimension_semantics<parallel>, #tpu.dimension_semantics<parallel>], iteration_bounds = array<i64: 2, 4>, scalar_prefetch = 0 : i64, scratch_operands = 1 : i64, tpu.core_type = #tpu.core_type<tc>, window_params = [{transform_indices = @transform_0, window_bounds = array<i64: 1, 1, 152, 36>}, {transform_indices = @transform_1, window_bounds = array<i64: 1, 1, 96, 4>}, {pipeline_mode = #tpu.pipeline_mode<synchronous>, transform_indices = @transform_2, window_bounds = array<i64: 36, 128>}, {pipeline_mode = #tpu.pipeline_mode<synchronous>, transform_indices = @transform_3, window_bounds = array<i64: 9, 128, 128>}, {transform_indices = @transform_4, window_bounds = array<i64: 1, 96, 128>}]} {
    %c0 = arith.constant 0 : index
    %c0_0 = arith.constant 0 : index
    %c0_1 = arith.constant 0 : index
    %c0_2 = arith.constant 0 : index
    %0 = vector.load %arg2[%c0, %c0_0, %c0_1, %c0_2] : memref<1x1x152x36xbf16, #tpu.memory_space<vmem>>, vector<1x1x152x36xbf16>
    %1 = vector.shape_cast %0 : vector<1x1x152x36xbf16> to vector<152x36xbf16>
    %c0_3 = arith.constant 0 : index
    %c0_4 = arith.constant 0 : index
    %2 = vector.load %arg4[%c0_3, %c0_4] : memref<36x128xbf16, #tpu.memory_space<vmem>>, vector<36x128xbf16>
    %cst = arith.constant dense<0.000000e+00> : vector<152x128xf32>
    %3 = tpu.matmul %1, %2, %cst {dimension_numbers = #tpu.dot_dimension_numbers<[1], [0], [0], [1], [0, 0, 1, 1], [], []>} : vector<152x36xbf16>, vector<36x128xbf16>, vector<152x128xf32> -> vector<152x128xf32>
    %cst_5 = arith.constant 0.000000e+00 : f32
    %4 = vector.broadcast %cst_5 : f32 to vector<152x128xf32>
    %5 = arith.maximumf %3, %4 : vector<152x128xf32>
    %6 = arith.truncf %5 : vector<152x128xf32> to vector<152x128xbf16>
    %c0_6 = arith.constant 0 : index
    %c0_7 = arith.constant 0 : index
    %7 = vector.load %arg7[%c0_6, %c0_7] : memref<152x128xbf16, #tpu.memory_space<vmem>>, vector<152x128xbf16>
    tpu.vector_store %arg7[%c0_6, %c0_7], %6 {strides = array<i32>} : memref<152x128xbf16, #tpu.memory_space<vmem>>, vector<152x128xbf16>,
    %c0_8 = arith.constant 0 : index
    %c0_9 = arith.constant 0 : index
    %8 = vector.load %arg7[%c0_8, %c0_9] : memref<152x128xbf16, #tpu.memory_space<vmem>>, vector<96x128xbf16>
    %c0_10 = arith.constant 0 : index
    %c0_11 = arith.constant 0 : index
    %c0_12 = arith.constant 0 : index
    %9 = vector.load %arg5[%c0_10, %c0_11, %c0_12] : memref<9x128x128xbf16, #tpu.memory_space<vmem>>, vector<1x128x128xbf16>
    %10 = vector.shape_cast %9 : vector<1x128x128xbf16> to vector<128x128xbf16>
    %cst_13 = arith.constant dense<0.000000e+00> : vector<96x128xf32>
    %11 = tpu.matmul %8, %10, %cst_13 {dimension_numbers = #tpu.dot_dimension_numbers<[1], [0], [0], [1], [0, 0, 1, 1], [], []>} : vector<96x128xbf16>, vector<128x128xbf16>, vector<96x128xf32> -> vector<96x128xf32>
    %c1 = arith.constant 1 : index
    %c0_14 = arith.constant 0 : index
    %12 = vector.load %arg7[%c1, %c0_14] : memref<152x128xbf16, #tpu.memory_space<vmem>>, vector<96x128xbf16>
    %c1_15 = arith.constant 1 : index
    %c0_16 = arith.constant 0 : index
    %c0_17 = arith.constant 0 : index
    %13 = vector.load %arg5[%c1_15, %c0_16, %c0_17] : memref<9x128x128xbf16, #tpu.memory_space<vmem>>, vector<1x128x128xbf16>
    %14 = vector.shape_cast %13 : vector<1x128x128xbf16> to vector<128x128xbf16>
    %cst_18 = arith.constant dense<0.000000e+00> : vector<96x128xf32>
    %15 = tpu.matmul %12, %14, %cst_18 {dimension_numbers = #tpu.dot_dimension_numbers<[1], [0], [0], [1], [0, 0, 1, 1], [], []>} : vector<96x128xbf16>, vector<128x128xbf16>, vector<96x128xf32> -> vector<96x128xf32>
    %16 = arith.addf %11, %15 : vector<96x128xf32>
    %c2 = arith.constant 2 : index
    %c0_19 = arith.constant 0 : index
    %17 = vector.load %arg7[%c2, %c0_19] : memref<152x128xbf16, #tpu.memory_space<vmem>>, vector<96x128xbf16>
    %c2_20 = arith.constant 2 : index
    %c0_21 = arith.constant 0 : index
    %c0_22 = arith.constant 0 : index
    %18 = vector.load %arg5[%c2_20, %c0_21, %c0_22] : memref<9x128x128xbf16, #tpu.memory_space<vmem>>, vector<1x128x128xbf16>
    %19 = vector.shape_cast %18 : vector<1x128x128xbf16> to vector<128x128xbf16>
    %cst_23 = arith.constant dense<0.000000e+00> : vector<96x128xf32>
    %20 = tpu.matmul %17, %19, %cst_23 {dimension_numbers = #tpu.dot_dimension_numbers<[1], [0], [0], [1], [0, 0, 1, 1], [], []>} : vector<96x128xbf16>, vector<128x128xbf16>, vector<96x128xf32> -> vector<96x128xf32>
    %21 = arith.addf %16, %20 : vector<96x128xf32>
    %c24 = arith.constant 24 : index
    %c0_24 = arith.constant 0 : index
    %22 = vector.load %arg7[%c24, %c0_24] : memref<152x128xbf16, #tpu.memory_space<vmem>>, vector<96x128xbf16>
    %c3 = arith.constant 3 : index
    %c0_25 = arith.constant 0 : index
    %c0_26 = arith.constant 0 : index
    %23 = vector.load %arg5[%c3, %c0_25, %c0_26] : memref<9x128x128xbf16, #tpu.memory_space<vmem>>, vector<1x128x128xbf16>
    %24 = vector.shape_cast %23 : vector<1x128x128xbf16> to vector<128x128xbf16>
    %cst_27 = arith.constant dense<0.000000e+00> : vector<96x128xf32>
    %25 = tpu.matmul %22, %24, %cst_27 {dimension_numbers = #tpu.dot_dimension_numbers<[1], [0], [0], [1], [0, 0, 1, 1], [], []>} : vector<96x128xbf16>, vector<128x128xbf16>, vector<96x128xf32> -> vector<96x128xf32>
    %26 = arith.addf %21, %25 : vector<96x128xf32>
    %c25 = arith.constant 25 : index
    %c0_28 = arith.constant 0 : index
    %27 = vector.load %arg7[%c25, %c0_28] : memref<152x128xbf16, #tpu.memory_space<vmem>>, vector<96x128xbf16>
    %c4 = arith.constant 4 : index
    %c0_29 = arith.constant 0 : index
    %c0_30 = arith.constant 0 : index
    %28 = vector.load %arg5[%c4, %c0_29, %c0_30] : memref<9x128x128xbf16, #tpu.memory_space<vmem>>, vector<1x128x128xbf16>
    %29 = vector.shape_cast %28 : vector<1x128x128xbf16> to vector<128x128xbf16>
    %cst_31 = arith.constant dense<0.000000e+00> : vector<96x128xf32>
    %30 = tpu.matmul %27, %29, %cst_31 {dimension_numbers = #tpu.dot_dimension_numbers<[1], [0], [0], [1], [0, 0, 1, 1], [], []>} : vector<96x128xbf16>, vector<128x128xbf16>, vector<96x128xf32> -> vector<96x128xf32>
    %31 = arith.addf %26, %30 : vector<96x128xf32>
    %c26 = arith.constant 26 : index
    %c0_32 = arith.constant 0 : index
    %32 = vector.load %arg7[%c26, %c0_32] : memref<152x128xbf16, #tpu.memory_space<vmem>>, vector<96x128xbf16>
    %c5 = arith.constant 5 : index
    %c0_33 = arith.constant 0 : index
    %c0_34 = arith.constant 0 : index
    %33 = vector.load %arg5[%c5, %c0_33, %c0_34] : memref<9x128x128xbf16, #tpu.memory_space<vmem>>, vector<1x128x128xbf16>
    %34 = vector.shape_cast %33 : vector<1x128x128xbf16> to vector<128x128xbf16>
    %cst_35 = arith.constant dense<0.000000e+00> : vector<96x128xf32>
    %35 = tpu.matmul %32, %34, %cst_35 {dimension_numbers = #tpu.dot_dimension_numbers<[1], [0], [0], [1], [0, 0, 1, 1], [], []>} : vector<96x128xbf16>, vector<128x128xbf16>, vector<96x128xf32> -> vector<96x128xf32>
    %36 = arith.addf %31, %35 : vector<96x128xf32>
    %c48 = arith.constant 48 : index
    %c0_36 = arith.constant 0 : index
    %37 = vector.load %arg7[%c48, %c0_36] : memref<152x128xbf16, #tpu.memory_space<vmem>>, vector<96x128xbf16>
    %c6 = arith.constant 6 : index
    %c0_37 = arith.constant 0 : index
    %c0_38 = arith.constant 0 : index
    %38 = vector.load %arg5[%c6, %c0_37, %c0_38] : memref<9x128x128xbf16, #tpu.memory_space<vmem>>, vector<1x128x128xbf16>
    %39 = vector.shape_cast %38 : vector<1x128x128xbf16> to vector<128x128xbf16>
    %cst_39 = arith.constant dense<0.000000e+00> : vector<96x128xf32>
    %40 = tpu.matmul %37, %39, %cst_39 {dimension_numbers = #tpu.dot_dimension_numbers<[1], [0], [0], [1], [0, 0, 1, 1], [], []>} : vector<96x128xbf16>, vector<128x128xbf16>, vector<96x128xf32> -> vector<96x128xf32>
    %41 = arith.addf %36, %40 : vector<96x128xf32>
    %c49 = arith.constant 49 : index
    %c0_40 = arith.constant 0 : index
    %42 = vector.load %arg7[%c49, %c0_40] : memref<152x128xbf16, #tpu.memory_space<vmem>>, vector<96x128xbf16>
    %c7 = arith.constant 7 : index
    %c0_41 = arith.constant 0 : index
    %c0_42 = arith.constant 0 : index
    %43 = vector.load %arg5[%c7, %c0_41, %c0_42] : memref<9x128x128xbf16, #tpu.memory_space<vmem>>, vector<1x128x128xbf16>
    %44 = vector.shape_cast %43 : vector<1x128x128xbf16> to vector<128x128xbf16>
    %cst_43 = arith.constant dense<0.000000e+00> : vector<96x128xf32>
    %45 = tpu.matmul %42, %44, %cst_43 {dimension_numbers = #tpu.dot_dimension_numbers<[1], [0], [0], [1], [0, 0, 1, 1], [], []>} : vector<96x128xbf16>, vector<128x128xbf16>, vector<96x128xf32> -> vector<96x128xf32>
    %46 = arith.addf %41, %45 : vector<96x128xf32>
    %c50 = arith.constant 50 : index
    %c0_44 = arith.constant 0 : index
    %47 = vector.load %arg7[%c50, %c0_44] : memref<152x128xbf16, #tpu.memory_space<vmem>>, vector<96x128xbf16>
    %c8 = arith.constant 8 : index
    %c0_45 = arith.constant 0 : index
    %c0_46 = arith.constant 0 : index
    %48 = vector.load %arg5[%c8, %c0_45, %c0_46] : memref<9x128x128xbf16, #tpu.memory_space<vmem>>, vector<1x128x128xbf16>
    %49 = vector.shape_cast %48 : vector<1x128x128xbf16> to vector<128x128xbf16>
    %cst_47 = arith.constant dense<0.000000e+00> : vector<96x128xf32>
    %50 = tpu.matmul %47, %49, %cst_47 {dimension_numbers = #tpu.dot_dimension_numbers<[1], [0], [0], [1], [0, 0, 1, 1], [], []>} : vector<96x128xbf16>, vector<128x128xbf16>, vector<96x128xf32> -> vector<96x128xf32>
    %51 = arith.addf %46, %50 : vector<96x128xf32>
    %cst_48 = arith.constant 0.000000e+00 : f32
    %52 = vector.broadcast %cst_48 : f32 to vector<96x128xf32>
    %53 = arith.maximumf %51, %52 : vector<96x128xf32>
    %c0_49 = arith.constant 0 : index
    %c0_50 = arith.constant 0 : index
    %c0_51 = arith.constant 0 : index
    %54 = vector.load %arg6[%c0_49, %c0_50, %c0_51] : memref<1x96x128xf32, #tpu.memory_space<vmem>>, vector<1x96x128xf32>
    %55 = vector.shape_cast %54 : vector<1x96x128xf32> to vector<96x128xf32>
    %56 = vector.shape_cast %53 : vector<96x128xf32> to vector<1x96x128xf32>
    tpu.vector_store %arg6[%c0_49, %c0_50, %c0_51], %56 {strides = array<i32>} : memref<1x96x128xf32, #tpu.memory_space<vmem>>, vector<1x96x128xf32>,
    %57 = vector.extract_strided_slice %51 {offsets = [0, 0], sizes = [96, 4], strides = [1, 1]} : vector<96x128xf32> to vector<96x4xf32>
    %c0_52 = arith.constant 0 : index
    %c0_53 = arith.constant 0 : index
    %c0_54 = arith.constant 0 : index
    %c0_55 = arith.constant 0 : index
    %58 = vector.load %arg3[%c0_52, %c0_53, %c0_54, %c0_55] : memref<1x1x96x4xf32, #tpu.memory_space<vmem>>, vector<1x1x96x4xf32>
    %59 = vector.shape_cast %58 : vector<1x1x96x4xf32> to vector<96x4xf32>
    %60 = arith.addf %57, %59 : vector<96x4xf32>
    %cst_56 = arith.constant 0.000000e+00 : f32
    %61 = vector.broadcast %cst_56 : f32 to vector<96x4xf32>
    %62 = arith.maximumf %60, %61 : vector<96x4xf32>
    %c0_57 = arith.constant 0 : index
    %c0_58 = arith.constant 0 : index
    %c0_59 = arith.constant 0 : index
    %63 = vector.load %arg6[%c0_57, %c0_58, %c0_59] : memref<1x96x128xf32, #tpu.memory_space<vmem>>, vector<1x96x4xf32>
    %64 = vector.shape_cast %63 : vector<1x96x4xf32> to vector<96x4xf32>
    %65 = vector.shape_cast %62 : vector<96x4xf32> to vector<1x96x4xf32>
    tpu.vector_store %arg6[%c0_57, %c0_58, %c0_59], %65 {strides = array<i32>} : memref<1x96x128xf32, #tpu.memory_space<vmem>>, vector<1x96x4xf32>,
    return
  }
  func.func @transform_0(%arg0: i32, %arg1: i32) -> (i32, i32, i32, i32) {
    %c0_i32 = arith.constant 0 : i32
    %c0_i32_0 = arith.constant 0 : i32
    %c0_i32_1 = arith.constant 0 : i32
    return %arg0, %arg1, %c0_i32, %c0_i32_0 : i32, i32, i32, i32
  }
  func.func @transform_1(%arg0: i32, %arg1: i32) -> (i32, i32, i32, i32) {
    %c0_i32 = arith.constant 0 : i32
    %c0_i32_0 = arith.constant 0 : i32
    %c0_i32_1 = arith.constant 0 : i32
    return %arg0, %arg1, %c0_i32, %c0_i32_0 : i32, i32, i32, i32
  }
  func.func @transform_2(%arg0: i32, %arg1: i32) -> (i32, i32) {
    %c0_i32 = arith.constant 0 : i32
    %c0_i32_0 = arith.constant 0 : i32
    %c0_i32_1 = arith.constant 0 : i32
    return %c0_i32, %c0_i32_0 : i32, i32
  }
  func.func @transform_3(%arg0: i32, %arg1: i32) -> (i32, i32, i32) {
    %c0_i32 = arith.constant 0 : i32
    %c0_i32_0 = arith.constant 0 : i32
    %c0_i32_1 = arith.constant 0 : i32
    %c0_i32_2 = arith.constant 0 : i32
    return %c0_i32, %c0_i32_0, %c0_i32_1 : i32, i32, i32
  }
  func.func @transform_4(%arg0: i32, %arg1: i32) -> (i32, i32, i32) {
    %c0_i32 = arith.constant 0 : i32
    %c0_i32_0 = arith.constant 0 : i32
    return %arg0, %arg1, %c0_i32 : i32, i32, i32
  }
}

</mosaic_0001>

<bundles_post_ra>
// kernel: basic_block_nobatchnorm.1
= control target key start
LH: loop header
LB: loop body
LE: loop exit
PB: predicated region body
PF: predicated region fallthrough
CT: control target
= control target key end

     0   :  { %s3792_s15 = smov 0   ;;  %s3794_s16 = smov 0   ;;  %s4322_s0 = inlined_call_operand.vmem [shape: bf16[2,4,152,36], index: 0, kind: input, shape index: {}]   ;;  %s4323_s1 = inlined_call_operand.vmem [shape: f32[2,4,96,4], index: 1, kind: input, shape index: {}]   ;;  %s4324_s2 = inlined_call_operand.vmem [shape: bf16[36,128], index: 2, kind: input, shape index: {}]   ;;  %s4325_s3 = inlined_call_operand.vmem [shape: bf16[9,128,128], index: 3, kind: input, shape index: {}]   ;;  %s4326_s4 = inlined_call_operand.vmem [shape: f32[2,384,128], index: 4, kind: output, shape index: {}]  }
   0x1   :  { %s3796_s17 = smov 0   ;;  %s3798_s18 = smov 0  }
   0x2   :  { %s3800_s19 = smov 0  }
   0x3 LB: > { %s23_s20 = sadd.s32 1, %s3757_s17  ;;  %s26_s21 = sadd.s32 1, %s3761_s18  ;;  %s3765_s19 = sphi %s3800_s19, %s14_s19   ;;  %s3761_s18 = sphi %s3798_s18, %s4330_s18   ;;  %s3757_s17 = sphi %s3796_s17, %s4329_s17   ;;  %s3753_s16 = sphi %s3794_s16, %s4328_s16   ;;  %s3749_s15 = sphi %s3792_s15, %s4327_s15  }
   0x4   : > { %p24_p0 = scmp.ge.s32.totalorder %s23_s20, 4  ;;  %p2692_p1 = scmp.ge.s32.totalorder %s3765_s19, 1 }
   0x5   : > { %p198_p2 = scmp.lt.s32.totalorder %s3765_s19, 9 }
   0x6   : > { %s4332_s20 = smov (%p24_p0, %s23_s20), 0  ;;  %s4334_s21 = smov (!%p24_p0, %s26_s21), %s3761_s18 }
   0x7   : > { %p199_p3 = pnand %p2692_p1, %p198_p2  ;;  %p28_p4 = scmp.ge.s32.totalorder %s4334_s21, 2 }
   0x8   : > { %v3606_v0 = vld [vmem:[%s4324_s2] sm:$0xff] (!%p199_p3)   ;;  %vm388_vm0 = vcmask (!%p199_p3), 1041408   ;;  %v3607_v1 = vld [vmem:[%s4324_s2 + $0x8] sm:$0xff] (!%p199_p3)   ;;  %p241_p5 = scmp.lt.s32.totalorder (!%p199_p3), %s3753_s16, 1  ;;  %p243_p6 = scmp.lt.s32.totalorder (!%p199_p3), %s3749_s15, 3  ;;  %vm357_vm1 = vcmask (!%p199_p3), 293888  }
   0x9   : > { %s4336_s21 = smov (%p28_p4, %s4334_s21), 0  ;;  %202 = sbr.rel (%p199_p3) target bundleno = 643 (0x283), region = 36 }
   0xa   : > { %3187 = vmatprep.subr.bf16.mxu0 (!%p199_p3), %v3606_v0  ;;  %v3608_v2 = vld [vmem:[%s4324_s2 + $0x10] ss:$0 sps:$4 sm:$0x33] (!%p199_p3)   ;;  %v3619_v4 = vld [vmem:[%s4325_s3 + $0x40] sm:$0xff] (!%p199_p3)   ;;  %v3620_v15 = vld [vmem:[%s4325_s3 + $0x48] sm:$0xff] (!%p199_p3)   ;;  %vm1042_vm3 = vcmask (!%p199_p3), 1046528  }
   0xb   : > { %3188 = vmatpush3.bf16.msra.mxu0 (!%p199_p3), %v3606_v0  ;;  %v390_v3 = vsel (!%p199_p3), %vm388_vm0, %v3608_v2, 0  ;;  %v3621_v16 = vld [vmem:[%s4325_s3 + $0x50] sm:$0xff] (!%p199_p3)   ;;  %v3622_v17 = vld [vmem:[%s4325_s3 + $0x100] sm:$0xff] (!%p199_p3)   ;;  %v3623_v18 = vld [vmem:[%s4325_s3 + $0x58] sm:$0xff] (!%p199_p3)   ;;  %vm698_vm2 = vsmask.f32 (!%p199_p3), 7424 }
   0xc   : > { %3189 = vmatprep.subr.bf16.mxu0 (!%p199_p3), %v3607_v1  ;;  %3325 = vmatprep.subr.bf16.mxu1 (!%p199_p3), %v3622_v17  ;;  %v3624_v19 = vld [vmem:[%s4325_s3 + $0x108] sm:$0xff] (!%p199_p3)   ;;  %v3625_v20 = vld [vmem:[%s4325_s3 + $0x60] sm:$0xff] (!%p199_p3)   ;;  %v3626_v21 = vld [vmem:[%s4325_s3 + $0x110] sm:$0xff] (!%p199_p3)   ;;  %s259_s10 = smul.u32 (!%p199_p3), 12, %s3749_s15  ;;  %vm2561_vm4 = vcmask (!%p199_p3), 31744  }
   0xd   : > { %3326 = vmatpush3.bf16.msra.mxu1 (!%p199_p3), %v3622_v17  ;;  %v3627_v22 = vld [vmem:[%s4325_s3 + $0x68] sm:$0xff] (!%p199_p3)   ;;  %v3628_v23 = vld [vmem:[%s4325_s3 + $0x118] sm:$0xff] (!%p199_p3)   ;;  %v3629_v24 = vld [vmem:[%s4325_s3 + $0x70] sm:$0xff] (!%p199_p3)  }
   0xe   : > { %3327 = vmatprep.subr.bf16.mxu1 (!%p199_p3), %v3624_v19  ;;  %v3630_v25 = vld [vmem:[%s4325_s3 + $0x120] sm:$0xff] (!%p199_p3)   ;;  %v3633_v26 = vld [vmem:[%s4325_s3 + $0x78] sm:$0xff] (!%p199_p3)   ;;  %v3634_v27 = vld [vmem:[%s4325_s3 + $0x128] sm:$0xff] (!%p199_p3)   ;;  %p262_p7 = scmp.lt.s32.totalorder (!%p199_p3), %s259_s10, 47 }
   0xf   : > { %3190 = vmatpush3.bf16.msra.mxu0 (!%p199_p3), %v3607_v1  ;;  %v3899_v28 = vld [vmem:[%s4325_s3] sm:$0xff] (!%p199_p3)   ;;  %v3636_v29 = vld [vmem:[%s4325_s3 + $0x130] sm:$0xff] (!%p199_p3)   ;;  %v3642_v30 = vld [vmem:[%s4325_s3 + $0x138] sm:$0xff] (!%p199_p3)  }
  0x10   : > { %s4338_s16 = smov (!%p241_p5, %s3753_s16), 1  ;;  %3561 = vmatprep.subr.msk.bf16.mxu0 %vm388_vm0, %v3608_v2  ;;  %v3911_v31 = vld [vmem:[%s4325_s3 + $0x140] sm:$0xff]   ;;  %s4340_s10 = smov (!%p262_p7, %s259_s10), 47 }
  0x11   : > { %s3837_s28 = scalar_select %p243_p6, %s3749_s15, 3  ;;  %3328 = vmatpush3.bf16.msra.mxu1 %v3624_v19 }
  0x12   : > { %s3563_s29 = smul.u32 76, %s4338_s16  ;;  %3329 = vmatprep.subr.bf16.mxu1 %v3626_v21 }
  0x13   : > { %s3562_s30 = smul.u32 19, %s3837_s28  ;;  %3192 = vmatpush3.bf16.msra.mxu0 %v390_v3 }
  0x14   : > { %3213 = vmatprep.subr.bf16.mxu0 %v3619_v4  ;;  %s3565_s12 = smul.u32 48, %s4338_s16 }
  0x15   : > { %s247_s7 = sadd.s32 %s3563_s29, %s3562_s30  ;;  %3330 = vmatpush3.bf16.msra.mxu1 %v3626_v21 }
  0x16   : > { %s2693_s8 = sshll.u32 %s247_s7, 2  ;;  %3331 = vmatprep.subr.bf16.mxu1 %v3628_v23  ;;  %s265_s22 = sadd.s32 %s3565_s12, %s4340_s10 }
  0x17   : > { %s249_s11 = scalar_lea.vmem %s4322_s0, %s2693_s8  ;;  %s2695_s26 = sshll.u32 %s265_s22, 3 }
  0x18   : > { %v3609_v5 = vld [vmem:[%s249_s11] sm:$0xff]   ;;  %v3610_v6 = vld [vmem:[%s249_s11 + $0x8] sm:$0xff]   ;;  %v3611_v7 = vld [vmem:[%s249_s11 + $0x10] sm:$0xff]  }
  0x19   : > { %3193 = vmatprep.mubr.msk.bf16.mxu0 %vm357_vm1, %v3609_v5  ;;  %v3612_v8 = vld [vmem:[%s249_s11 + $0x18] sm:$0xff]   ;;  %v3613_v9 = vld [vmem:[%s249_s11 + $0x20] sm:$0xff]   ;;  %v3614_v10 = vld [vmem:[%s249_s11 + $0x28] sm:$0xff]   ;;  %3332 = vmatpush3.bf16.msra.mxu1 %v3628_v23 }
  0x1a   : > { %3194 = vmatmul.mubr.msk.bf16.vlgmr.msra.gmra.mrb[0].mxu0 %vm357_vm1, %v3610_v6  ;;  %v3615_v11 = vld [vmem:[%s249_s11 + $0x30] sm:$0xff]   ;;  %v3616_v12 = vld [vmem:[%s249_s11 + $0x38] sm:$0xff]   ;;  %v3617_v13 = vld [vmem:[%s249_s11 + $0x40] sm:$0xff]   ;;  %3333 = vmatprep.subr.bf16.mxu1 %v3630_v25 }
  0x1b   : > { %3197 = vmatprep.mubr.msk.bf16.mxu0 %vm357_vm1, %v3611_v7  ;;  %3214 = vmatpush3.bf16.msra.mxu0 %v3619_v4  ;;  %v3618_v14 = vld [vmem:[%s249_s11 + $0x48] ss:$0 sps:$4 sm:$0xff]   ;;  %s3564_s11 = smul.u32 12, %s3837_s28  ;;  %s4254_s28 = scalar_lea.vmem %s4326_s4, %s2695_s26 }
  0x1c   : > { %3215 = vmatprep.subr.bf16.mxu0 %v3620_v15 }
  0x1d   : > { %3334 = vmatpush3.bf16.msra.mxu1 %v3630_v25  ;;  %s256_s13 = sadd.s32 %s3565_s12, %s3564_s11 }
  0x1e   : > { %3335 = vmatprep.subr.bf16.mxu1 %v3634_v27  ;;  %s2694_s14 = sshll.u32 %s256_s13, 3 }
  0x1f   : > { %3216 = vmatpush3.bf16.msra.mxu0 %v3620_v15  ;;  %s4247_s25 = scalar_lea.vmem %s4323_s1, %s2694_s14 }
  0x20   : > { %3217 = vmatprep.subr.bf16.mxu0 %v3621_v16 }
  0x21   : > { %3336 = vmatpush3.bf16.msra.mxu1 %v3634_v27 }
  0x22   : > { %3198 = vmatmul.mubr.msk.bf16.gmra.mrb[4].mxu0 %vm357_vm1, %v3612_v8  ;;  %3337 = vmatprep.subr.bf16.mxu1 %v3636_v29 }
  0x23   : > { %3201 = vmatprep.mubr.msk.bf16.mxu0 %vm357_vm1, %v3613_v9  ;;  %3218 = vmatpush3.bf16.msra.mxu0 %v3621_v16 }
  0x24   : > { %3219 = vmatprep.subr.bf16.mxu0 %v3623_v18 }
  0x25   : > { %3338 = vmatpush3.bf16.msra.mxu1 %v3636_v29 }
  0x26   : > { %3339 = vmatprep.subr.bf16.mxu1 %v3642_v30 }
  0x27   : > { %3220 = vmatpush3.bf16.msra.mxu0 %v3623_v18 }
  0x28   : > { %3221 = vmatprep.subr.bf16.mxu0 %v3625_v20 }
  0x29   : > { %3340 = vmatpush3.bf16.msra.mxu1 %v3642_v30  ;;  %v3641_v30 = vld [vmem:[%s4325_s3 + $0x8] sm:$0xff]  }
  0x2a   : > { %3202 = vmatmul.mubr.msk.bf16.gmra.mrb[8].mxu0 %vm357_vm1, %v3614_v10  ;;  %3353 = vmatprep.subr.bf16.mxu1 %v3911_v31 }
  0x2b   : > { %3205 = vmatprep.mubr.msk.bf16.mxu0 %vm357_vm1, %v3615_v11  ;;  %3222 = vmatpush3.bf16.msra.mxu0 %v3625_v20 }
  0x2c   : > { %3223 = vmatprep.subr.bf16.mxu0 %v3627_v22 }
  0x2f   : > { %3224 = vmatpush3.bf16.msra.mxu0 %v3627_v22 }
  0x30   : > { %3225 = vmatprep.subr.bf16.mxu0 %v3629_v24 }
  0x32   : > { %3206 = vmatmul.mubr.msk.bf16.gmra.mrb[12].mxu0 %vm357_vm1, %v3616_v12 }
  0x33   : > { %3209 = vmatprep.mubr.msk.bf16.mxu0 %vm357_vm1, %v3617_v13  ;;  %3226 = vmatpush3.bf16.msra.mxu0 %v3629_v24 }
  0x34   : > { %3227 = vmatprep.subr.bf16.mxu0 %v3633_v26 }
  0x37   : > { %3228 = vmatpush3.bf16.msra.mxu0 %v3633_v26 }
  0x38   : > { %3241 = vmatprep.subr.bf16.mxu0 %v3899_v28 }
  0x3a   : > { %3210 = vmatmul.mubr.msk.bf16.gmra.mrb[16].mxu0 %vm357_vm1, %v3618_v14 }
  0xed   : > { %v3195_v32 = vpop.f32.mrb[0].mxu0 }
  0xee   : > { %v426_v33 = vpop.f32.mrb[1].mxu0  ;;  %v506_v35 = vmax.f32 %v3195_v32, 0.0 }
  0xef   : > { %v3196_v34 = vpop.f32.mrb[2].mxu0  ;;  %v504_v38 = vmax.f32 %v426_v33, 0.0 }
  0xf0   : > { %v507_v36 = vmax.f32 %v3196_v34, 0.0  ;;  %v429_v37 = vpop.f32.mrb[3].mxu0 }
  0xf1   : > { %v505_v39 = vmax.f32 %v429_v37, 0.0 }
  0xf2   : > { %v3003_v40 = vpack.c.bf16 %v507_v36, %v506_v35 }
  0xf3   : > { %v2998_v41 = vpack.c.bf16 %v505_v39, %v504_v38 }
  0xf4   : > { %3040 = vst [vmem:[#allocation2 + $0x8] sm:$0xff] %v3003_v40  }
  0xf5   : > { %2999 = vst [vmem:[#allocation2] sm:$0xff] %v2998_v41   ;;  %v3199_v42 = vpop.f32.mrb[4].mxu0  ;;  %v3643_v41 = vld [vmem:[%s4325_s3 + $0x10] sm:$0xff]  }
  0xf6   : > { %v442_v43 = vpop.f32.mrb[5].mxu0  ;;  %v510_v45 = vmax.f32 %v3199_v42, 0.0 }
  0xf7   : > { %v3200_v44 = vpop.f32.mrb[6].mxu0  ;;  %v508_v48 = vmax.f32 %v442_v43, 0.0 }
  0xf8   : > { %v511_v46 = vmax.f32 %v3200_v44, 0.0  ;;  %v445_v47 = vpop.f32.mrb[7].mxu0 }
  0xf9   : > { %v509_v49 = vmax.f32 %v445_v47, 0.0 }
  0xfa   : > { %v3013_v50 = vpack.c.bf16 %v511_v46, %v510_v45 }
  0xfb   : > { %v3008_v51 = vpack.c.bf16 %v509_v49, %v508_v48  ;;  %v3914_v52 = vld [vmem:[#allocation2 + $0x8] sm:$0xff]  }
  0xfc   : > { %3042 = vst [vmem:[#allocation2 + $0x18] sm:$0xff] %v3013_v50   ;;  %v619_v53 = vld [vmem:[#allocation2] sm:$0xf]  ;;  %v3916_v54 = vld [vmem:[#allocation2 + $0x4] sm:$0xf]  ;;  %v707_v60 = vshll.u32 %v3914_v52, 16 }
  0xfd   : > { %3041 = vst [vmem:[#allocation2 + $0x10] sm:$0xff] %v3008_v51   ;;  %v3203_v55 = vpop.f32.mrb[8].mxu0  ;;  %v3919_v56 = vcombine.low %v619_v53, %v3916_v54  ;;  %v1409_v9 = vld [vmem:[#allocation2 + $0xc] sm:$0xf]  ;;  %v711_v10 = vshrl.u32 %v3914_v52, 16 }
  0xfe   : > { %v458_v57 = vpop.f32.mrb[9].mxu0  ;;  %v514_v61 = vmax.f32 %v3203_v55, 0.0  ;;  %v709_v7 = vrot.slane %v707_v60, 1 }
  0xff   : > { %v3204_v58 = vpop.f32.mrb[10].mxu0  ;;  %v702_v59 = vshll.u32 %v3919_v56, 16  ;;  %v512_v0 = vmax.f32 %v458_v57, 0.0  ;;  %v700_v2 = vshrl.u32 %v3919_v56, 16 }
 0x100   : > { %v515_v62 = vmax.f32 %v3204_v58, 0.0  ;;  %v461_v63 = vpop.f32.mrb[11].mxu0  ;;  %v713_v21 = vor.u32 %v711_v10, %v709_v7 }
 0x101   : > { %v513_v1 = vmax.f32 %v461_v63, 0.0  ;;  %v704_v3 = vrot.slane %v702_v59, 1 }
 0x102   : > { %v3023_v4 = vpack.c.bf16 %v515_v62, %v514_v61 }
 0x103   : > { %v3018_v5 = vpack.c.bf16 %v513_v1, %v512_v0  ;;  %v705_v6 = vor.u32 %v704_v3, %v700_v2  ;;  %v3924_v8 = vld [vmem:[#allocation2 + $0x18] sm:$0xff]  }
 0x104   : > { %3044 = vst [vmem:[#allocation2 + $0x28] sm:$0xff] %v3023_v4   ;;  %v3927_v11 = vld [vmem:[#allocation2 + $0x10] sm:$0xff]   ;;  %v723_v14 = vshll.u32 %v3924_v8, 16  ;;  %v727_v48 = vshrl.u32 %v3924_v8, 16 }
 0x105   : > { %3043 = vst [vmem:[#allocation2 + $0x20] sm:$0xff] %v3018_v5   ;;  %v3207_v12 = vpop.f32.mrb[12].mxu0  ;;  %v710_v13 = vsel %vm698_vm2, %v705_v6, %v709_v7  ;;  %v3931_v15 = vld [vmem:[#allocation2 + $0x10] sm:$0xf]  ;;  %v715_v18 = vshll.u32 %v3927_v11, 16  ;;  %v3935_v23 = vld [vmem:[#allocation2 + $0x14] sm:$0xff]  }
 0x106   : > { %v518_v16 = vmax.f32 %v3207_v12, 0.0  ;;  %v474_v17 = vpop.f32.mrb[13].mxu0  ;;  %3229 = vmatprep.mubr.bf16.mxu0 %v710_v13  ;;  %v2848_v19 = vcombine.low %v1409_v9, %v3931_v15  ;;  %v719_v27 = vshrl.u32 %v3927_v11, 16  ;;  %v725_v33 = vrot.slane %v723_v14, 1  ;;  %v3649_v14 = vld [vmem:[%s4325_s3 + $0x18] sm:$0xff]  }
 0x107   : > { %v516_v20 = vmax.f32 %v474_v17, 0.0  ;;  %v3208_v22 = vpop.f32.mrb[14].mxu0  ;;  %v717_v26 = vrot.slane %v715_v18, 1  ;;  %v1480_v35 = vshll.u32 %v3935_v23, 16  ;;  %v1484_v61 = vshrl.u32 %v3935_v23, 16 }
 0x108   : > { %v519_v24 = vmax.f32 %v3208_v22, 0.0  ;;  %v477_v25 = vpop.f32.mrb[15].mxu0  ;;  %v1475_v29 = vshll.u32 %v2848_v19, 16  ;;  %v1473_v34 = vshrl.u32 %v2848_v19, 16  ;;  %v729_v60 = vor.u32 %v727_v48, %v725_v33  ;;  %v3657_v48 = vld [vmem:[%s4325_s3 + $0x158] sm:$0xff]  }
 0x109   : > { %v517_v32 = vmax.f32 %v477_v25, 0.0  ;;  %v718_v37 = vsel %vm698_vm2, %v713_v21, %v717_v26  ;;  %v721_v38 = vor.u32 %v719_v27, %v717_v26  ;;  %v1482_v45 = vrot.slane %v1480_v35, 1 }
 0x10a   : > { %v3033_v36 = vpack.c.bf16 %v519_v24, %v518_v16  ;;  %v1477_v39 = vrot.slane %v1475_v29, 1  ;;  %3230 = vmatmul.mubr.bf16.vlgmr.msra.gmra.mrb[20].mxu0 %v718_v37  ;;  %v3650_v16 = vld [vmem:[%s4325_s3 + $0x148] sm:$0xff]   ;;  %v3652_v29 = vld [vmem:[%s4325_s3 + $0x150] sm:$0xff]  }
 0x10b   : > { %v3028_v40 = vpack.c.bf16 %v517_v32, %v516_v20  ;;  %v3946_v42 = vld [vmem:[#allocation2 + $0x28] sm:$0xff]   ;;  %3242 = vmatpush3.bf16.msra.mxu0 %v3899_v28  ;;  %v726_v43 = vsel %vm698_vm2, %v721_v38, %v725_v33  ;;  %v1486_v5 = vor.u32 %v1484_v61, %v1482_v45  ;;  %v3651_v20 = vld [vmem:[%s4325_s3 + $0x20] sm:$0xff]  }
 0x10c   : > { %3046 = vst [vmem:[#allocation2 + $0x38] sm:$0xff] %v3033_v36   ;;  %v1478_v44 = vor.u32 %v1477_v39, %v1473_v34  ;;  %v3950_v46 = vld [vmem:[#allocation2 + $0x20] sm:$0xff]   ;;  %3233 = vmatprep.mubr.bf16.mxu0 %v726_v43  ;;  %3243 = vmatprep.subr.bf16.mxu0 %v3641_v30  ;;  %v739_v57 = vshll.u32 %v3946_v42, 16  ;;  %v743_v26 = vshrl.u32 %v3946_v42, 16  ;;  %v1052_v61 = vrot.slane %v3946_v42, 1 }
 0x10d   : > { %3045 = vst [vmem:[#allocation2 + $0x30] sm:$0xff] %v3028_v40   ;;  %v3211_v47 = vpop.f32.mrb[16].mxu0  ;;  %v3953_v49 = vld [vmem:[#allocation2 + $0x1c] sm:$0xff]   ;;  %v3955_v50 = vld [vmem:[#allocation2 + $0x24] sm:$0xff]   ;;  %v731_v55 = vshll.u32 %v3950_v46, 16  ;;  %v735_v2 = vshrl.u32 %v3950_v46, 16 }
 0x10e   : > { %v522_v51 = vmax.f32 %v3211_v47, 0.0  ;;  %v490_v53 = vpop.f32.mrb[17].mxu0  ;;  %v1483_v28 = vsel %vm698_vm2, %v1478_v44, %v1482_v45  ;;  %v1488_v62 = vshll.u32 %v3953_v49, 16  ;;  %v1496_v3 = vshll.u32 %v3955_v50, 16  ;;  %v1671_v47 = vld [vmem:[#allocation2 + $0xc] sm:$0xe] }
 0x10f   : > { %v520_v58 = vmax.f32 %v490_v53, 0.0  ;;  %3341 = vmatprep.mubr.bf16.mxu1 %v1483_v28  ;;  %v3212_v59 = vpop.f32.mrb[18].mxu0  ;;  %3244 = vmatpush3.bf16.msra.mxu0 %v3641_v30  ;;  %v733_v1 = vrot.slane %v731_v55, 1  ;;  %v1492_v7 = vshrl.u32 %v3953_v49, 16  ;;  %v741_v12 = vrot.slane %v739_v57, 1  ;;  %v3658_v57 = vld [vmem:[%s4325_s3 + $0x30] sm:$0xff]  }
 0x110   : > { %v2994_v63 = vpack.c.bf16 %v522_v51, %v522_v51  ;;  %v493_v0 = vpop.f32.mrb[19].mxu0  ;;  %3245 = vmatprep.subr.bf16.mxu0 %v3643_v41  ;;  %v1490_v6 = vrot.slane %v1488_v62, 1  ;;  %v1498_v13 = vrot.slane %v1496_v3, 1  ;;  %v1500_v32 = vshrl.u32 %v3955_v50, 16  ;;  %v3659_v62 = vld [vmem:[%s4325_s3 + $0x160] sm:$0xff]  }
 0x111   : > { %v521_v4 = vmax.f32 %v493_v0, 0.0  ;;  %v734_v9 = vsel %vm698_vm2, %v729_v60, %v733_v1  ;;  %v737_v10 = vor.u32 %v735_v2, %v733_v1  ;;  %v2879_v28 = vcombine.low %v1671_v47, %v3931_v15  ;;  %v3687_v47 = vld [vmem:[#allocation2 + $0x20] sm:$0xff]  }
 0x112   : > { %618 = vst [vmem:[#allocation2 + $0x48] sm:$0xf] %v2994_v63  ;;  %3234 = vmatmul.mubr.bf16.gmra.mrb[24].mxu0 %v734_v9  ;;  %v1491_v18 = vsel %vm698_vm2, %v1486_v5, %v1490_v6  ;;  %v1494_v19 = vor.u32 %v1492_v7, %v1490_v6  ;;  %v1502_v37 = vor.u32 %v1500_v32, %v1498_v13  ;;  %v1048_v59 = vrot.slane %v3924_v8, 1  ;;  %v3662_v6 = vld [vmem:[%s4325_s3 + $0x38] sm:$0xff]   ;;  %v3663_v7 = vld [vmem:[%s4325_s3 + $0x168] sm:$0xff]  }
 0x113   : > { %v3038_v17 = vpack.c.bf16 %v521_v4, %v520_v58  ;;  %3246 = vmatpush3.bf16.msra.mxu0 %v3643_v41  ;;  %3342 = vmatmul.mubr.bf16.vlgmr.msra.gmra.mrb[0].mxu1 %v1491_v18  ;;  %v742_v21 = vsel %vm698_vm2, %v737_v10, %v741_v12  ;;  %v3990_v35 = vld [vmem:[#allocation2 + $0x3c] ss:$0 sps:$4 sm:$0x11]   ;;  %v3656_v41 = vld [vmem:[%s4325_s3 + $0x28] sm:$0xff]   ;;  %v1046_v58 = vrot.slane %v3927_v11, 1  ;;  %v1050_v60 = vrot.slane %v3950_v46, 1 }
 0x114   : > { %v3653_v22 = vld [vmem:[#allocation2 + $0x30] ss:$0 sps:$4 sm:$0x11]   ;;  %3354 = vmatpush3.bf16.msra.mxu1 %v3911_v31  ;;  %3237 = vmatprep.mubr.bf16.mxu0 %v742_v21  ;;  %v1499_v25 = vsel %vm698_vm2, %v1494_v19, %v1498_v13  ;;  %v3982_v27 = vld [vmem:[#allocation2 + $0x34] sm:$0xff]   ;;  %v745_v31 = vor.u32 %v743_v26, %v741_v12  ;;  %v1520_v53 = vshll.u32 %v3990_v35, 16  ;;  %v1692_v4 = vrot.slane %v2879_v28, 1 }
 0x115   : > { %v3977_v24 = vld [vmem:[#allocation2 + $0x2c] sm:$0xff]   ;;  %3047 = vst [vmem:[#allocation2 + $0x40] sm:$0xff] %v3038_v17   ;;  %3345 = vmatprep.mubr.bf16.mxu1 %v1499_v25  ;;  %3247 = vmatprep.subr.bf16.mxu0 %v3649_v14  ;;  %v747_v30 = vshll.u32 %v3653_v22, 16  ;;  %v1512_v34 = vshll.u32 %v3982_v27, 16  ;;  %v1516_v51 = vshrl.u32 %v3982_v27, 16  ;;  %v1054_v15 = vrot.slane %v3653_v22, 1 }
 0x116   : > { %v1504_v33 = vshll.u32 %v3977_v24, 16  ;;  %3355 = vmatprep.subr.bf16.mxu1 %v3650_v16  ;;  %v1508_v39 = vshrl.u32 %v3977_v24, 16  ;;  %v4019_v63 = vsel %vm1042_vm3, %v1046_v58, %v1048_v59  ;;  %v4022_v0 = vsel %vm1042_vm3, %v1048_v59, %v1050_v60  ;;  %v3665_v12 = vld [vmem:[%s4325_s3 + $0x170] sm:$0xff]   ;;  %v3666_v13 = vld [vmem:[%s4325_s3 + $0x88] sm:$0xff]   ;;  %v3669_v17 = vld [vmem:[%s4325_s3 + $0x180] sm:$0xff]  }
 0x117   : > { %3248 = vmatpush3.bf16.msra.mxu0 %v3649_v14  ;;  %v749_v36 = vrot.slane %v747_v30, 1  ;;  %v1514_v40 = vrot.slane %v1512_v34, 1  ;;  %v4025_v2 = vsel %vm1042_vm3, %v1050_v60, %v1052_v61  ;;  %v4028_v3 = vsel %vm1042_vm3, %v1052_v61, %v1054_v15  ;;  %v3667_v14 = vld [vmem:[%s4325_s3 + $0x178] sm:$0xff]   ;;  %v3671_v25 = vld [vmem:[%s4325_s3 + $0x188] sm:$0xff]   ;;  %v3678_v34 = vld [vmem:[%s4325_s3 + $0x1a0] sm:$0xff]  }
 0x118   : > { %v1506_v38 = vrot.slane %v1504_v33, 1  ;;  %3356 = vmatpush3.bf16.msra.mxu1 %v3650_v16  ;;  %3249 = vmatprep.subr.bf16.mxu0 %v3651_v20  ;;  %v1693_v5 = vrot.slane %v3935_v23, 1  ;;  %v3664_v23 = vld [vmem:[%s4325_s3 + $0x80] sm:$0xff]   ;;  %v3668_v16 = vld [vmem:[%s4325_s3 + $0x90] sm:$0xff]   ;;  %v1695_v18 = vrot.slane %v3953_v49, 1  ;;  %v1697_v19 = vrot.slane %v3955_v50, 1 }
 0x119   : > { %3357 = vmatprep.subr.bf16.mxu1 %v3652_v29  ;;  %v750_v43 = vsel %vm698_vm2, %v745_v31, %v749_v36  ;;  %v1518_v1 = vor.u32 %v1516_v51, %v1514_v40  ;;  %v3670_v21 = vld [vmem:[%s4325_s3 + $0x98] sm:$0xff]   ;;  %v1699_v26 = vrot.slane %v3977_v24, 1  ;;  %v1044_v30 = vrot.slane %v3914_v52, 1  ;;  %v3675_v32 = vld [vmem:[%s4325_s3 + $0xa8] sm:$0xff]   ;;  %v3694_v59 = vld [vmem:[%s4325_s3 + $0x1d0] sm:$0xff]  }
 0x11a   : > { %v1507_v44 = vsel %vm698_vm2, %v1502_v37, %v1506_v38  ;;  %v1510_v45 = vor.u32 %v1508_v39, %v1506_v38  ;;  %3238 = vmatmul.mubr.bf16.gmra.mrb[28].mxu0 %v750_v43  ;;  %v1694_v10 = vsel %vm1042_vm3, %v1692_v4, %v1693_v5  ;;  %v1696_v22 = vsel %vm1042_vm3, %v1693_v5, %v1695_v18  ;;  %v3680_v36 = vld [vmem:[%s4325_s3 + $0xb8] sm:$0xff]   ;;  %v3681_v39 = vld [vmem:[%s4325_s3 + $0x1a8] sm:$0xff]   ;;  %v4144_v60 = vld [vmem:[#allocation2 + $0x20] sm:$0xff]  }
 0x11b   : > { %3250 = vmatpush3.bf16.msra.mxu0 %v3651_v20  ;;  %3346 = vmatmul.mubr.bf16.gmra.mrb[4].mxu1 %v1507_v44  ;;  %v1021_v20 = vld [vmem:[#allocation2] sm:$0xe]  ;;  %v1698_v50 = vsel %vm1042_vm3, %v1695_v18, %v1697_v19  ;;  %v1700_v24 = vsel %vm1042_vm3, %v1697_v19, %v1699_v26  ;;  %v1703_v31 = vrot.slane %v3990_v35, 1  ;;  %v3679_v38 = vld [vmem:[#allocation2 + $0x18] sm:$0xff]   ;;  %v1047_v43 = vsel %vm1042_vm3, %v1044_v30, %v1046_v58  ;;  %v3691_v51 = vld [vmem:[%s4325_s3 + $0x1c8] sm:$0xff]  }
 0x11c   : > { %v1515_v55 = vsel %vm698_vm2, %v1510_v45, %v1514_v40  ;;  %3358 = vmatpush3.bf16.msra.mxu1 %v3652_v29  ;;  %3257 = vmatprep.mubr.bf16.mxu0 %v3919_v56  ;;  %v1522_v56 = vrot.slane %v1520_v53, 1  ;;  %v2793_v49 = vcombine.low %v1021_v20, %v3916_v54  ;;  %v3673_v54 = vld [vmem:[%s4325_s3 + $0x190] sm:$0xff]   ;;  %v3682_v35 = vld [vmem:[%s4325_s3 + $0xc0] sm:$0xff]   ;;  %v3685_v44 = vld [vmem:[%s4325_s3 + $0x1b8] sm:$0xff]  }
 0x11d   : > { %3349 = vmatprep.mubr.bf16.mxu1 %v1515_v55  ;;  %3251 = vmatprep.subr.bf16.mxu0 %v3656_v41  ;;  %v3683_v40 = vld [vmem:[%s4325_s3 + $0x1b0] sm:$0xff]   ;;  %v3689_v53 = vld [vmem:[#allocation2 + $0x28] sm:$0xff]   ;;  %v2058_v28 = vld [vmem:[#allocation2 + $0x18] sm:$0xf] }
 0x11e   : > { %3359 = vmatprep.subr.bf16.mxu1 %v3657_v48  ;;  %v1523_v9 = vsel %vm698_vm2, %v1518_v1, %v1522_v56  ;;  %v1043_v29 = vrot.slane %v2793_v49, 1  ;;  %v3686_v45 = vld [vmem:[%s4325_s3 + $0xd0] sm:$0xff]   ;;  %v4134_v55 = vld [vmem:[#allocation2 + $0x1c] sm:$0xf]  ;;  %v2129_v56 = vshll.u32 %v4144_v60, 16  ;;  %v3700_v5 = vld [vmem:[#allocation2 + $0x40] sm:$0xff]  }
 0x11f   : > { %3252 = vmatpush3.bf16.msra.mxu0 %v3656_v41  ;;  %v3684_v41 = vld [vmem:[%s4325_s3 + $0xc8] sm:$0xff]   ;;  %v2934_v58 = vcombine.low %v2058_v28, %v4134_v55  ;;  %v3693_v61 = vld [vmem:[#allocation2 + $0x30] sm:$0xff]   ;;  %v3698_v1 = vld [vmem:[%s4325_s3 + $0x1d8] sm:$0xff]  }
 0x120   : > { %3360 = vmatpush3.bf16.msra.mxu1 %v3657_v48  ;;  %3253 = vmatprep.subr.bf16.mxu0 %v3658_v57  ;;  %v1045_v33 = vsel %vm1042_vm3, %v1043_v29, %v1044_v30  ;;  %v3690_v48 = vld [vmem:[%s4325_s3 + $0xd8] sm:$0xff]   ;;  %v3695_v15 = vld [vmem:[#allocation2 + $0xc] sm:$0xff]   ;;  %v3712_v49 = vld [vmem:[%s4325_s3 + $0x200] sm:$0xff]  }
 0x121   : > { %3361 = vmatprep.subr.bf16.mxu1 %v3659_v62  ;;  %v3708_v18 = vld [vmem:[#allocation2 + $0x1c] sm:$0xff]   ;;  %v3713_v30 = vld [vmem:[#allocation2 + $0x2c] sm:$0xff]  }
 0x122   : > { %v3709_v19 = vld [vmem:[%s4325_s3 + $0x1f8] sm:$0xff]   ;;  %v4186_v29 = vld [vmem:[#allocation2 + $0x40] sm:$0xff]  }
 0x123   : > { %3254 = vmatpush3.bf16.msra.mxu0 %v3658_v57  ;;  %3350 = vmatmul.mubr.bf16.gmra.mrb[8].mxu1 %v1523_v9  ;;  %v3692_v57 = vld [vmem:[%s4325_s3 + $0xe0] sm:$0xff]  }
 0x124   : > { %3362 = vmatpush3.bf16.msra.mxu1 %v3659_v62  ;;  %3369 = vmatprep.mubr.bf16.mxu1 %v1694_v10  ;;  %v3697_v62 = vld [vmem:[%s4325_s3 + $0xe8] sm:$0xff]   ;;  %v3704_v10 = vld [vmem:[%s4325_s3 + $0xf8] sm:$0xff]  }
 0x125   : > { %3255 = vmatprep.subr.bf16.mxu0 %v3662_v6  ;;  %3363 = vmatprep.subr.bf16.mxu1 %v3663_v7 }
 0x127   : > { %3256 = vmatpush3.bf16.msra.mxu0 %v3662_v6  ;;  %v2122_v6 = vshrl.u32 %v2934_v58, 16 }
 0x128   : > { %3364 = vmatpush3.bf16.msra.mxu1 %v3663_v7  ;;  %3269 = vmatprep.subr.bf16.mxu0 %v3664_v23  ;;  %v2131_v7 = vrot.slane %v2129_v56, 1 }
 0x129   : > { %3365 = vmatprep.subr.bf16.mxu1 %v3665_v12 }
 0x12a   : > { %3258 = vmatmul.mubr.bf16.vlgmr.msra.gmra.mrb[20].mxu0 %v3914_v52 }
 0x12b   : > { %3261 = vmatprep.mubr.bf16.mxu0 %v3927_v11  ;;  %3270 = vmatpush3.bf16.msra.mxu0 %v3664_v23  ;;  %v3688_v11 = vld [vmem:[%s4325_s3 + $0x1c0] sm:$0xff]   ;;  %v3705_v23 = vld [vmem:[%s4325_s3 + $0x1e8] sm:$0xff]  }
 0x12c   : > { %3366 = vmatpush3.bf16.msra.mxu1 %v3665_v12  ;;  %3271 = vmatprep.subr.bf16.mxu0 %v3666_v13 }
 0x12d   : > { %3367 = vmatprep.subr.bf16.mxu1 %v3667_v14 }
 0x12f   : > { %3272 = vmatpush3.bf16.msra.mxu0 %v3666_v13  ;;  %v3707_v13 = vld [vmem:[%s4325_s3 + $0x1f0] sm:$0xff]  }
 0x130   : > { %3368 = vmatpush3.bf16.msra.mxu1 %v3667_v14  ;;  %3273 = vmatprep.subr.bf16.mxu0 %v3668_v16  ;;  %v4170_v14 = vld [vmem:[#allocation2 + $0x28] sm:$0xff]  }
 0x131   : > { %3381 = vmatprep.subr.bf16.mxu1 %v3669_v17  ;;  %v2137_v20 = vshll.u32 %v4170_v14, 16 }
 0x132   : > { %3262 = vmatmul.mubr.bf16.gmra.mrb[24].mxu0 %v3924_v8  ;;  %v3672_v8 = vld [vmem:[%s4325_s3 + $0xa0] sm:$0xff]  }
 0x133   : > { %3370 = vmatmul.mubr.bf16.vlgmr.msra.gmra.mrb[0].mxu1 %v1696_v22  ;;  %3265 = vmatprep.mubr.bf16.mxu0 %v3950_v46  ;;  %v1701_v46 = vrot.slane %v3982_v27, 1  ;;  %v3676_v27 = vld [vmem:[%s4325_s3 + $0x198] sm:$0xff]   ;;  %v2133_v22 = vshrl.u32 %v4144_v60, 16 }
 0x134   : > { %3274 = vmatpush3.bf16.msra.mxu0 %v3668_v16  ;;  %3373 = vmatprep.mubr.bf16.mxu1 %v1698_v50  ;;  %v4172_v16 = vld [vmem:[#allocation2 + $0x30] sm:$0xff]   ;;  %v4183_v50 = vld [vmem:[#allocation2 + $0x38] sm:$0xff]  }
 0x135   : > { %3382 = vmatpush3.bf16.msra.mxu1 %v3669_v17  ;;  %3275 = vmatprep.subr.bf16.mxu0 %v3670_v21  ;;  %v1702_v52 = vsel %vm1042_vm3, %v1699_v26, %v1701_v46  ;;  %v1704_v37 = vsel %vm1042_vm3, %v1701_v46, %v1703_v31  ;;  %v3706_v17 = vld [vmem:[#allocation2 + $0x14] sm:$0xff]   ;;  %v2141_v26 = vshrl.u32 %v4170_v14, 16  ;;  %v3710_v46 = vld [vmem:[#allocation2 + $0x24] sm:$0xff]   ;;  %v2161_v31 = vshll.u32 %v4186_v29, 16 }
 0x136   : > { %3383 = vmatprep.subr.bf16.mxu1 %v3671_v25 }
 0x138   : > { %3276 = vmatpush3.bf16.msra.mxu0 %v3670_v21  ;;  %v2145_v21 = vshll.u32 %v4172_v16, 16 }
 0x139   : > { %3384 = vmatpush3.bf16.msra.mxu1 %v3671_v25  ;;  %3277 = vmatprep.subr.bf16.mxu0 %v3672_v8  ;;  %v2139_v25 = vrot.slane %v2137_v20, 1 }
 0x13a   : > { %3266 = vmatmul.mubr.bf16.gmra.mrb[28].mxu0 %v3946_v42  ;;  %3385 = vmatprep.subr.bf16.mxu1 %v3673_v54  ;;  %v3677_v42 = vld [vmem:[%s4325_s3 + $0xb0] sm:$0xff]  }
 0x13b   : > { %3374 = vmatmul.mubr.bf16.gmra.mrb[4].mxu1 %v1700_v24  ;;  %3285 = vmatprep.mubr.bf16.mxu0 %v1045_v33  ;;  %v3715_v24 = vld [vmem:[%s4325_s3 + $0x208] sm:$0xff]   ;;  %v2153_v33 = vshll.u32 %v4183_v50, 16 }
 0x13c   : > { %3278 = vmatpush3.bf16.msra.mxu0 %v3672_v8  ;;  %3377 = vmatprep.mubr.bf16.mxu1 %v1702_v52  ;;  %v2135_v8 = vor.u32 %v2133_v22, %v2131_v7  ;;  %v2149_v52 = vshrl.u32 %v4172_v16, 16 }
 0x13d   : > { %3386 = vmatpush3.bf16.msra.mxu1 %v3673_v54  ;;  %3279 = vmatprep.subr.bf16.mxu0 %v3675_v32  ;;  %v2147_v54 = vrot.slane %v2145_v21, 1 }
 0x13e   : > { %3387 = vmatprep.subr.bf16.mxu1 %v3676_v27 }
 0x140   : > { %3280 = vmatpush3.bf16.msra.mxu0 %v3675_v32  ;;  %v2143_v32 = vor.u32 %v2141_v26, %v2139_v25 }
 0x141   : > { %3388 = vmatpush3.bf16.msra.mxu1 %v3676_v27  ;;  %3281 = vmatprep.subr.bf16.mxu0 %v3677_v42  ;;  %v2140_v27 = vsel %vm698_vm2, %v2135_v8, %v2139_v25  ;;  %v2527_v25 = vld [vmem:[%s4247_s25 + $0x10] sm:$0xff]  ;;  %v2525_v8 = vld [vmem:[%s4247_s25] sm:$0xff] }
 0x142   : > { %3389 = vmatprep.subr.bf16.mxu1 %v3678_v34 }
 0x143   : > { %3378 = vmatmul.mubr.bf16.gmra.mrb[8].mxu1 %v1704_v37  ;;  %v2157_v37 = vshrl.u32 %v4183_v50, 16 }
 0x144   : > { %3282 = vmatpush3.bf16.msra.mxu0 %v3677_v42  ;;  %3397 = vmatprep.mubr.bf16.mxu1 %v3679_v38  ;;  %v2148_v42 = vsel %vm698_vm2, %v2143_v32, %v2147_v54  ;;  %v2151_v38 = vor.u32 %v2149_v52, %v2147_v54 }
 0x145   : > { %3390 = vmatpush3.bf16.msra.mxu1 %v3678_v34  ;;  %3283 = vmatprep.subr.bf16.mxu0 %v3680_v36  ;;  %v2155_v34 = vrot.slane %v2153_v33, 1  ;;  %v2526_v33 = vld [vmem:[%s4247_s25 + $0x8] sm:$0xff] }
 0x146   : > { %3391 = vmatprep.subr.bf16.mxu1 %v3681_v39 }
 0x148   : > { %3284 = vmatpush3.bf16.msra.mxu0 %v3680_v36  ;;  %v3718_v36 = vld [vmem:[%s4325_s3 + $0x210] sm:$0xff]  }
 0x149   : > { %3392 = vmatpush3.bf16.msra.mxu1 %v3681_v39  ;;  %3297 = vmatprep.subr.bf16.mxu0 %v3682_v35  ;;  %v3721_v39 = vld [vmem:[#allocation2 + $0x48] ss:$0 sps:$4 sm:$0x11]  }
 0x14a   : > { %3393 = vmatprep.subr.bf16.mxu1 %v3683_v40 }
 0x14b   : > { %3286 = vmatmul.mubr.bf16.vlgmr.msra.gmra.mrb[20].mxu0 %v1047_v43  ;;  %v3720_v43 = vld [vmem:[%s4325_s3 + $0x218] sm:$0xff]  }
 0x14c   : > { %3289 = vmatprep.mubr.bf16.mxu0 %v4019_v63  ;;  %3298 = vmatpush3.bf16.msra.mxu0 %v3682_v35  ;;  %v2124_v63 = vshll.u32 %v2934_v58, 16  ;;  %v2163_v35 = vrot.slane %v2161_v31, 1  ;;  %v2342_v58 = vrot.slane %v4144_v60, 1  ;;  %v3726_v60 = vld [vmem:[%s4325_s3 + $0x238] sm:$0xff]  }
 0x14d   : > { %3394 = vmatpush3.bf16.msra.mxu1 %v3683_v40  ;;  %3299 = vmatprep.subr.bf16.mxu0 %v3684_v41  ;;  %v3716_v40 = vld [vmem:[#allocation2 + $0x34] sm:$0xff]  }
 0x14e   : > { %3395 = vmatprep.subr.bf16.mxu1 %v3685_v44  ;;  %v2126_v4 = vrot.slane %v2124_v63, 1  ;;  %v2344_v63 = vrot.slane %v4170_v14, 1 }
 0x150   : > { %3300 = vmatpush3.bf16.msra.mxu0 %v3684_v41  ;;  %v2127_v9 = vor.u32 %v2126_v4, %v2122_v6  ;;  %v2159_v41 = vor.u32 %v2157_v37, %v2155_v34  ;;  %v2350_v4 = vrot.slane %v4186_v29, 1  ;;  %v2352_v6 = vrot.slane %v3721_v39, 1 }
 0x151   : > { %3396 = vmatpush3.bf16.msra.mxu1 %v3685_v44  ;;  %3301 = vmatprep.subr.bf16.mxu0 %v3686_v45  ;;  %v2156_v44 = vsel %vm698_vm2, %v2151_v38, %v2155_v34 }
 0x152   : > { %3409 = vmatprep.subr.bf16.mxu1 %v3688_v11  ;;  %v2132_v12 = vsel %vm698_vm2, %v2127_v9, %v2131_v7  ;;  %v2353_v7 = vsel %vm1042_vm3, %v2350_v4, %v2352_v6 }
 0x153   : > { %3290 = vmatmul.mubr.bf16.gmra.mrb[24].mxu0 %v4022_v0  ;;  %v3696_v0 = vld [vmem:[#allocation2 + $0x38] sm:$0xff]  }
 0x154   : > { %3398 = vmatmul.mubr.bf16.vlgmr.msra.gmra.mrb[0].mxu1 %v3687_v47  ;;  %3293 = vmatprep.mubr.bf16.mxu0 %v4025_v2  ;;  %v3699_v2 = vld [vmem:[%s4325_s3 + $0xf0] sm:$0xff]   ;;  %v2320_v47 = vld [vmem:[#allocation2 + $0x18] sm:$0xe] }
 0x155   : > { %3302 = vmatpush3.bf16.msra.mxu0 %v3686_v45  ;;  %3401 = vmatprep.mubr.bf16.mxu1 %v3689_v53  ;;  %v2165_v45 = vshrl.u32 %v4186_v29, 16  ;;  %v2965_v53 = vcombine.low %v2320_v47, %v4134_v55  ;;  %v3725_v55 = vld [vmem:[%s4325_s3 + $0x230] sm:$0xff]   ;;  %v2528_v29 = vld [vmem:[%s4247_s25 + $0x18] sm:$0xff] }
 0x156   : > { %3410 = vmatpush3.bf16.msra.mxu1 %v3688_v11  ;;  %3303 = vmatprep.subr.bf16.mxu0 %v3690_v48  ;;  %v2169_v11 = vshll.u32 %v3721_v39, 16 }
 0x157   : > { %3411 = vmatprep.subr.bf16.mxu1 %v3691_v51  ;;  %v2167_v28 = vor.u32 %v2165_v45, %v2163_v35 }
 0x159   : > { %3304 = vmatpush3.bf16.msra.mxu0 %v3690_v48  ;;  %v2164_v48 = vsel %vm698_vm2, %v2159_v41, %v2163_v35 }
 0x15a   : > { %3412 = vmatpush3.bf16.msra.mxu1 %v3691_v51  ;;  %3305 = vmatprep.subr.bf16.mxu0 %v3692_v57  ;;  %v3722_v51 = vld [vmem:[%s4325_s3 + $0x220] sm:$0xff]  }
 0x15b   : > { %3294 = vmatmul.mubr.bf16.gmra.mrb[28].mxu0 %v4028_v3  ;;  %3413 = vmatprep.subr.bf16.mxu1 %v3694_v59  ;;  %v3701_v3 = vld [vmem:[%s4325_s3 + $0x1e0] sm:$0xff]  }
 0x15c   : > { %3402 = vmatmul.mubr.bf16.gmra.mrb[4].mxu1 %v3693_v61  ;;  %3313 = vmatprep.mubr.bf16.mxu0 %v3695_v15  ;;  %v3724_v61 = vld [vmem:[%s4325_s3 + $0x228] sm:$0xff]  }
 0x15d   : > { %3306 = vmatpush3.bf16.msra.mxu0 %v3692_v57  ;;  %3405 = vmatprep.mubr.bf16.mxu1 %v3696_v0  ;;  %v2171_v57 = vrot.slane %v2169_v11, 1  ;;  %v2346_v0 = vrot.slane %v4172_v16, 1  ;;  %v2529_v11 = vld [vmem:[%s4247_s25 + $0x20] sm:$0xff] }
 0x15e   : > { %3414 = vmatpush3.bf16.msra.mxu1 %v3694_v59  ;;  %3307 = vmatprep.subr.bf16.mxu0 %v3697_v62  ;;  %v2341_v59 = vrot.slane %v2965_v53, 1 }
 0x15f   : > { %3415 = vmatprep.subr.bf16.mxu1 %v3698_v1  ;;  %v2172_v15 = vsel %vm698_vm2, %v2167_v28, %v2171_v57  ;;  %v2347_v56 = vsel %vm1042_vm3, %v2344_v63, %v2346_v0 }
 0x161   : > { %3308 = vmatpush3.bf16.msra.mxu0 %v3697_v62  ;;  %v2343_v62 = vsel %vm1042_vm3, %v2341_v59, %v2342_v58  ;;  %v2530_v59 = vld [vmem:[%s4247_s25 + $0x28] sm:$0xff] }
 0x162   : > { %3416 = vmatpush3.bf16.msra.mxu1 %v3698_v1  ;;  %3309 = vmatprep.subr.bf16.mxu0 %v3699_v2  ;;  %v2345_v1 = vsel %vm1042_vm3, %v2342_v58, %v2344_v63 }
 0x163   : > { %3417 = vmatprep.subr.bf16.mxu1 %v3701_v3 }
 0x164   : > { %3406 = vmatmul.mubr.bf16.gmra.mrb[8].mxu1 %v3700_v5 }
 0x165   : > { %3310 = vmatpush3.bf16.msra.mxu0 %v3699_v2  ;;  %3425 = vmatprep.mubr.bf16.mxu1 %v2132_v12  ;;  %v2348_v2 = vrot.slane %v4183_v50, 1 }
 0x166   : > { %3418 = vmatpush3.bf16.msra.mxu1 %v3701_v3  ;;  %3311 = vmatprep.subr.bf16.mxu0 %v3704_v10 }
 0x167   : > { %3419 = vmatprep.subr.bf16.mxu1 %v3705_v23  ;;  %v2349_v3 = vsel %vm1042_vm3, %v2346_v0, %v2348_v2  ;;  %v2351_v5 = vsel %vm1042_vm3, %v2348_v2, %v2350_v4 }
 0x169   : > { %3312 = vmatpush3.bf16.msra.mxu0 %v3704_v10 }
 0x16a   : > { %3420 = vmatpush3.bf16.msra.mxu1 %v3705_v23 }
 0x16b   : > { %3421 = vmatprep.subr.bf16.mxu1 %v3707_v13 }
 0x16c   : > { %3314 = vmatmul.mubr.bf16.vlgmr.msra.gmra.mrb[20].mxu0 %v3706_v17 }
 0x16d   : > { %3317 = vmatprep.mubr.bf16.mxu0 %v3708_v18 }
 0x16e   : > { %3422 = vmatpush3.bf16.msra.mxu1 %v3707_v13 }
 0x16f   : > { %3423 = vmatprep.subr.bf16.mxu1 %v3709_v19 }
 0x172   : > { %3424 = vmatpush3.bf16.msra.mxu1 %v3709_v19 }
 0x173   : > { %3437 = vmatprep.subr.bf16.mxu1 %v3712_v49 }
 0x174   : > { %3318 = vmatmul.mubr.bf16.gmra.mrb[24].mxu0 %v3710_v46 }
 0x175   : > { %3426 = vmatmul.mubr.bf16.vlgmr.msra.gmra.mrb[0].mxu1 %v2140_v27  ;;  %3321 = vmatprep.mubr.bf16.mxu0 %v3713_v30 }
 0x176   : > { %3429 = vmatprep.mubr.bf16.mxu1 %v2148_v42  ;;  %3438 = vmatpush3.bf16.msra.mxu1 %v3712_v49 }
 0x177   : > { %3439 = vmatprep.subr.bf16.mxu1 %v3715_v24 }
 0x17a   : > { %3440 = vmatpush3.bf16.msra.mxu1 %v3715_v24 }
 0x17b   : > { %3441 = vmatprep.subr.bf16.mxu1 %v3718_v36 }
 0x17c   : > { %3322 = vmatmul.mubr.bf16.gmra.mrb[28].mxu0 %v3716_v40 }
 0x17d   : > { %3430 = vmatmul.mubr.bf16.gmra.mrb[4].mxu1 %v2156_v44 }
 0x17e   : > { %3433 = vmatprep.mubr.bf16.mxu1 %v2164_v48  ;;  %3442 = vmatpush3.bf16.msra.mxu1 %v3718_v36 }
 0x17f   : > { %3443 = vmatprep.subr.bf16.mxu1 %v3720_v43 }
 0x182   : > { %3444 = vmatpush3.bf16.msra.mxu1 %v3720_v43  ;;  %v2531_v43 = vld [vmem:[%s4247_s25 + $0x30] sm:$0xff] }
 0x183   : > { %3445 = vmatprep.subr.bf16.mxu1 %v3722_v51 }
 0x185   : > { %3434 = vmatmul.mubr.bf16.gmra.mrb[8].mxu1 %v2172_v15 }
 0x186   : > { %3446 = vmatpush3.bf16.msra.mxu1 %v3722_v51  ;;  %3453 = vmatprep.mubr.bf16.mxu1 %v2343_v62  ;;  %v2532_v51 = vld [vmem:[%s4247_s25 + $0x38] sm:$0xff] }
 0x187   : > { %3447 = vmatprep.subr.bf16.mxu1 %v3724_v61 }
 0x18a   : > { %3448 = vmatpush3.bf16.msra.mxu1 %v3724_v61 }
 0x18b   : > { %3449 = vmatprep.subr.bf16.mxu1 %v3725_v55 }
 0x18e   : > { %3450 = vmatpush3.bf16.msra.mxu1 %v3725_v55 }
 0x18f   : > { %3451 = vmatprep.subr.bf16.mxu1 %v3726_v60 }
 0x192   : > { %3452 = vmatpush3.bf16.msra.mxu1 %v3726_v60 }
 0x195   : > { %3454 = vmatmul.mubr.bf16.vlgmr.msra.gmra.mrb[0].mxu1 %v2345_v1 }
 0x196   : > { %3457 = vmatprep.mubr.bf16.mxu1 %v2347_v56 }
 0x19d   : > { %3458 = vmatmul.mubr.bf16.gmra.mrb[4].mxu1 %v2349_v3 }
 0x19e   : > { %3461 = vmatprep.mubr.bf16.mxu1 %v2351_v5  ;;  %v2535_v5 = vld [vmem:[%s4247_s25 + $0x50] sm:$0xff] }
 0x1a5   : > { %3462 = vmatmul.mubr.bf16.gmra.mrb[8].mxu1 %v2353_v7 }
 0x23f   : > { %v3315_v9 = vpop.f32.mrb[20].mxu0 }
 0x240   : > { %v1350_v10 = vpop.f32.mrb[21].mxu0 }
 0x241   : > { %v3316_v23 = vpop.f32.mrb[22].mxu0 }
 0x242   : > { %v1353_v12 = vpop.f32.mrb[23].mxu0 }
 0x247   : > { %v3319_v13 = vpop.f32.mrb[24].mxu0 }
 0x248   : > { %v1366_v14 = vpop.f32.mrb[25].mxu0 }
 0x249   : > { %v3320_v16 = vpop.f32.mrb[26].mxu0 }
 0x24a   : > { %v4231_v17 = vpop.f32.mrb[27].mxu0 }
 0x24f   : > { %v4233_v18 = vpop.f32.mrb[28].mxu0 }
 0x250   : > { %v4235_v19 = vpop.f32.mrb[29].mxu0 }
 0x251   : > { %v4237_v20 = vpop.f32.mrb[30].mxu0 }
 0x252   : > { %v4239_v21 = vpop.f32.mrb[31].mxu0 }
 0x268   : > { %v3455_v22 = vpop.f32.mrb[0].mxu1 }
 0x269   : > { %v3465_v49 = vadd.f32 %v3455_v22, %v3315_v9  ;;  %v2442_v50 = vpop.f32.mrb[1].mxu1  ;;  %v2533_v9 = vld [vmem:[%s4247_s25 + $0x40] sm:$0xff]  ;;  %v2534_v22 = vld [vmem:[%s4247_s25 + $0x48] sm:$0xff] }
 0x26a   : > { %v3466_v26 = vadd.f32 %v2442_v50, %v1350_v10  ;;  %v3456_v54 = vpop.f32.mrb[2].mxu1 }
 0x26b   : > { %v2503_v46 = vmax.f32 %v3465_v49, 0.0  ;;  %v2539_v30 = vadd.f32 %v3465_v49, %v2527_v25  ;;  %v3467_v32 = vadd.f32 %v3456_v54, %v3316_v23  ;;  %v2445_v24 = vpop.f32.mrb[3].mxu1 }
 0x26c   : > { %v2501_v27 = vmax.f32 %v3466_v26, 0.0  ;;  %v2537_v52 = vadd.f32 %v3466_v26, %v2525_v8  ;;  %v3468_v42 = vadd.f32 %v2445_v24, %v1353_v12  ;;  %v2536_v12 = vld [vmem:[%s4247_s25 + $0x58] sm:$0xff] }
 0x26d   : > { %2515 = vst [vmem:[%s4254_s28 + $0x10] sm:$0xff] %v2503_v46  ;;  %v2551_v31 = vmax.f32 %v2539_v30, 0.0  ;;  %v2504_v34 = vmax.f32 %v3467_v32, 0.0  ;;  %v2540_v36 = vadd.f32 %v3467_v32, %v2528_v29 }
 0x26e   : > { %2513 = vst [vmem:[%s4254_s28] sm:$0xff] %v2501_v27  ;;  %v2549_v37 = vmax.f32 %v2537_v52, 0.0  ;;  %v2502_v38 = vmax.f32 %v3468_v42, 0.0  ;;  %v2538_v39 = vadd.f32 %v3468_v42, %v2526_v33 }
 0x26f   : > { %2564 = vst.msk [vmem:[%s4254_s28 + $0x10] sm:$0xff] %vm2561_vm4, %v2551_v31  ;;  %2516 = vst [vmem:[%s4254_s28 + $0x18] sm:$0xff] %v2504_v34  ;;  %v2552_v35 = vmax.f32 %v2540_v36, 0.0 }
 0x270   : > { %2562 = vst.msk [vmem:[%s4254_s28] sm:$0xff] %vm2561_vm4, %v2549_v37  ;;  %2514 = vst [vmem:[%s4254_s28 + $0x8] sm:$0xff] %v2502_v38  ;;  %v2550_v40 = vmax.f32 %v2538_v39, 0.0  ;;  %v3459_v41 = vpop.f32.mrb[4].mxu1 }
 0x271   : > { %2565 = vst.msk [vmem:[%s4254_s28 + $0x18] sm:$0xff] %vm2561_vm4, %v2552_v35  ;;  %v3469_v44 = vadd.f32 %v3459_v41, %v3319_v13  ;;  %v2458_v45 = vpop.f32.mrb[5].mxu1 }
 0x272   : > { %2563 = vst.msk [vmem:[%s4254_s28 + $0x8] sm:$0xff] %vm2561_vm4, %v2550_v40  ;;  %v3470_v47 = vadd.f32 %v2458_v45, %v1366_v14  ;;  %v3460_v48 = vpop.f32.mrb[6].mxu1 }
 0x273   : > { %v2507_v53 = vmax.f32 %v3469_v44, 0.0  ;;  %v2543_v28 = vadd.f32 %v3469_v44, %v2531_v43  ;;  %v3471_v57 = vadd.f32 %v3460_v48, %v3320_v16  ;;  %v2461_v58 = vpop.f32.mrb[7].mxu1 }
 0x274   : > { %v2505_v61 = vmax.f32 %v3470_v47, 0.0  ;;  %v2541_v15 = vadd.f32 %v3470_v47, %v2529_v11  ;;  %v3472_v62 = vadd.f32 %v2461_v58, %v4231_v17 }
 0x275   : > { %2519 = vst [vmem:[%s4254_s28 + $0x30] sm:$0xff] %v2507_v53  ;;  %v2555_v55 = vmax.f32 %v2543_v28, 0.0  ;;  %v2508_v60 = vmax.f32 %v3471_v57, 0.0  ;;  %v2544_v63 = vadd.f32 %v3471_v57, %v2532_v51 }
 0x276   : > { %2517 = vst [vmem:[%s4254_s28 + $0x20] sm:$0xff] %v2505_v61  ;;  %v2553_v0 = vmax.f32 %v2541_v15, 0.0  ;;  %v2506_v1 = vmax.f32 %v3472_v62, 0.0  ;;  %v2542_v56 = vadd.f32 %v3472_v62, %v2530_v59 }
 0x277   : > { %2568 = vst.msk [vmem:[%s4254_s28 + $0x30] sm:$0xff] %vm2561_vm4, %v2555_v55  ;;  %2520 = vst [vmem:[%s4254_s28 + $0x38] sm:$0xff] %v2508_v60  ;;  %v2556_v2 = vmax.f32 %v2544_v63, 0.0 }
 0x278   : > { %2566 = vst.msk [vmem:[%s4254_s28 + $0x20] sm:$0xff] %vm2561_vm4, %v2553_v0  ;;  %2518 = vst [vmem:[%s4254_s28 + $0x28] sm:$0xff] %v2506_v1  ;;  %v2554_v4 = vmax.f32 %v2542_v56, 0.0  ;;  %v3463_v3 = vpop.f32.mrb[8].mxu1 }
 0x279   : > { %2569 = vst.msk [vmem:[%s4254_s28 + $0x38] sm:$0xff] %vm2561_vm4, %v2556_v2  ;;  %v3473_v6 = vadd.f32 %v3463_v3, %v4233_v18  ;;  %v2474_v7 = vpop.f32.mrb[9].mxu1 }
 0x27a   : > { %2567 = vst.msk [vmem:[%s4254_s28 + $0x28] sm:$0xff] %vm2561_vm4, %v2554_v4  ;;  %v3474_v10 = vadd.f32 %v2474_v7, %v4235_v19  ;;  %v3464_v23 = vpop.f32.mrb[10].mxu1 }
 0x27b   : > { %v2511_v13 = vmax.f32 %v3473_v6, 0.0  ;;  %v2547_v14 = vadd.f32 %v3473_v6, %v2535_v5  ;;  %v3475_v16 = vadd.f32 %v3464_v23, %v4237_v20  ;;  %v2477_v17 = vpop.f32.mrb[11].mxu1 }
 0x27c   : > { %v2509_v18 = vmax.f32 %v3474_v10, 0.0  ;;  %v2545_v25 = vadd.f32 %v3474_v10, %v2533_v9  ;;  %v3476_v49 = vadd.f32 %v2477_v17, %v4239_v21 }
 0x27d   : > { %2523 = vst [vmem:[%s4254_s28 + $0x50] sm:$0xff] %v2511_v13  ;;  %v2559_v19 = vmax.f32 %v2547_v14, 0.0  ;;  %v2512_v50 = vmax.f32 %v3475_v16, 0.0  ;;  %v2548_v8 = vadd.f32 %v3475_v16, %v2536_v12 }
 0x27e   : > { %2521 = vst [vmem:[%s4254_s28 + $0x40] sm:$0xff] %v2509_v18  ;;  %v2557_v26 = vmax.f32 %v2545_v25, 0.0  ;;  %v2510_v54 = vmax.f32 %v3476_v49, 0.0  ;;  %v2546_v29 = vadd.f32 %v3476_v49, %v2534_v22 }
 0x27f   : > { %2572 = vst.msk [vmem:[%s4254_s28 + $0x50] sm:$0xff] %vm2561_vm4, %v2559_v19  ;;  %2524 = vst [vmem:[%s4254_s28 + $0x58] sm:$0xff] %v2512_v50  ;;  %v2560_v20 = vmax.f32 %v2548_v8, 0.0 }
 0x280   : > { %2570 = vst.msk [vmem:[%s4254_s28 + $0x40] sm:$0xff] %vm2561_vm4, %v2557_v26  ;;  %2522 = vst [vmem:[%s4254_s28 + $0x48] sm:$0xff] %v2510_v54  ;;  %v2558_v46 = vmax.f32 %v2546_v29, 0.0 }
 0x281   : > { %2573 = vst.msk [vmem:[%s4254_s28 + $0x58] sm:$0xff] %vm2561_vm4, %v2560_v20 }
 0x282   : > { %2571 = vst.msk [vmem:[%s4254_s28 + $0x48] sm:$0xff] %vm2561_vm4, %v2558_v46 }
 0x283 PF: > { %s14_s19 = sadd.s32 1, %s3765_s19   ;;  %s4327_s15 = smov %s3757_s17 }
 0x284   : > { %p11_p8 = scmp.ge.s32.totalorder %s14_s19, 10   ;;  %s4328_s16 = smov %s3761_s18 }
 0x285   : > { %s4329_s17 = smov %s4332_s20  ;;  %s4330_s18 = smov %s4336_s21 }
 0x286   :  { %13 = sbr.rel (!%p11_p8) target bundleno = 3 (0x3), region = 77 }

</bundles_post_ra>
